<compile_context>
chip_gen: v7x
topology: tpu7x:2x2x1
jax: 0.10.0
libtpu: 0.0.40
codegen_flags: <defaults>
</compile_context>

<pallas_src>
import jax
import jax.numpy as jnp
from jax.experimental import pallas as pl
from jax.experimental.pallas import tpu as pltpu

# Synthetic small constants (stand-ins for Constants.*)
BATCH_SIZE = 2
SEQUENCE_LENGTH = 8
SOPRANO_CLASS_NUMBER = 16
ALTO_CLASS_NUMBER = 16
TENOR_CLASS_NUMBER = 16
BASS_CLASS_NUMBER = 16
HIDDEN = 200
HIDDEN_PAD = 256              # pad 200 -> 256 (multiple of 128) for unmasked lanes
DROPOUT_RATE = 0.5            # inference mode: dropout is identity

HEAD_CLASSES = (ALTO_CLASS_NUMBER, TENOR_CLASS_NUMBER, BASS_CLASS_NUMBER)
HEAD_WIDTH = ALTO_CLASS_NUMBER * SEQUENCE_LENGTH               # 128 lanes / head
FUSED_WIDTH = sum(c * SEQUENCE_LENGTH for c in HEAD_CLASSES)   # 384

# The in-kernel reductions assume identical heads, power-of-two class count,
# and exactly one 128-lane tile per head block (16 classes * 8 seq = 128).
assert all(c == ALTO_CLASS_NUMBER for c in HEAD_CLASSES)
assert ALTO_CLASS_NUMBER & (ALTO_CLASS_NUMBER - 1) == 0
assert HEAD_WIDTH == 128

_ROLL_SHIFTS = tuple(SEQUENCE_LENGTH * (1 << k)
                     for k in range(ALTO_CLASS_NUMBER.bit_length() - 1))  # 8,16,32,64

_BF16_SUBLANE = 16   # bf16 packs 2 rows per sublane -> align batch tiles to 16


def harmonization_kernel(x_ref, w01_ref, b01_ref, w2_ref, b2_ref,
                         wh_ref, bh_ref, sum_ref, o_ref):
    f32 = jnp.float32
    bf16 = jnp.bfloat16

    # fused (input @ hidden1) linear -> relu; dropout1 is identity in eval mode
    h = jnp.maximum(
        jnp.dot(x_ref[...], w01_ref[...], preferred_element_type=f32)
        + b01_ref[...], 0.0)
    # TODO(synk): dropout layers implemented as inference-mode identity (no RNG masking).
    # hidden2 -> relu; dropout2 identity
    h = jnp.maximum(
        jnp.dot(h.astype(bf16), w2_ref[...], preferred_element_type=f32)
        + b2_ref[...], 0.0)
    # fused heads: one matmul + relu; within each 128-lane block lane = c*SEQ + s
    z = jnp.maximum(
        jnp.dot(h.astype(bf16), wh_ref[...], preferred_element_type=f32)
        + bh_ref[...], 0.0)

    # log_softmax over the class dim of each head block:
    #   max  -> XLU cyclic roll tree (4 rolls, visits every class at fixed s)
    #   sum  -> MXU bf16 matmul with a constant 0/1 block-sum matrix
    # Both results are already broadcast to all lanes of the group, so the
    # epilogue is full-width VPU/EUP math with unmasked 128-lane stores.
    for blk in range(len(HEAD_CLASSES)):
        zh = z[:, blk * HEAD_WIDTH:(blk + 1) * HEAD_WIDTH]   # tile-aligned slice
        m = zh
        for sh in _ROLL_SHIFTS:
            m = jnp.maximum(m, pltpu.roll(m, shift=sh, axis=1))
        e = jnp.exp(zh - m)
        s = jnp.dot(e.astype(bf16), sum_ref[...], preferred_element_type=f32)
        o_ref[:, blk * HEAD_WIDTH:(blk + 1) * HEAD_WIDTH] = zh - m - jnp.log(s)


def _round_up(n, m):
    return ((n + m - 1) // m) * m


def _prepare_params(p):
    """Fuse input->hidden1, fuse the 3 heads, pad HIDDEN 200->256, cast bf16."""
    f32 = jnp.float32
    bf16 = jnp.bfloat16
    pad_h = HIDDEN_PAD - HIDDEN

    # Algebraic fusion of the activation-free input linear into hidden1 (f32).
    w01 = p["wi"].astype(f32) @ p["w1"].astype(f32)                    # (d_in, H)
    b01 = p["bi"].astype(f32) @ p["w1"].astype(f32) + p["b1"].astype(f32)
    w01 = jnp.pad(w01, ((0, 0), (0, pad_h))).astype(bf16)
    b01 = jnp.pad(b01, ((0, 0), (0, pad_h)))                           # f32 bias

    w2 = jnp.pad(p["w2"].astype(f32), ((0, pad_h), (0, pad_h))).astype(bf16)
    b2 = jnp.pad(p["b2"].astype(f32), ((0, 0), (0, pad_h)))

    wh = jnp.concatenate([p["wa"], p["wt"], p["wb"]], axis=1).astype(f32)
    wh = jnp.pad(wh, ((0, pad_h), (0, 0))).astype(bf16)
    bh = jnp.concatenate([p["ba"], p["bt"], p["bb"]], axis=1).astype(f32)

    # Constant 0/1 block-sum matrix: S[i,j] = 1 iff i%SEQ == j%SEQ, so
    # (e @ S)[r, j] = sum over classes of e at seq = j%SEQ, broadcast to lanes.
    lane = jnp.arange(HEAD_WIDTH)
    sum_mat = (lane[:, None] % SEQUENCE_LENGTH
               == lane[None, :] % SEQUENCE_LENGTH).astype(bf16)

    return w01, b01, w2, b2, wh, bh, sum_mat


def f_harmonization_forward(x, params):
    B = x.shape[0]
    d_in = SEQUENCE_LENGTH * SOPRANO_CLASS_NUMBER
    x_flat = x.reshape(B, d_in).astype(jnp.bfloat16)

    # Pad batch to the bf16 sublane tile (16); ensure >=2 grid steps when the
    # batch allows it (v7x megacore), and cap tiles at 512 rows.
    B_pad = _round_up(B, _BF16_SUBLANE)
    if B_pad >= 2 * _BF16_SUBLANE:
        tm = min(512, _round_up((B_pad + 1) // 2, _BF16_SUBLANE))
    else:
        tm = B_pad
    B_pad = _round_up(B_pad, tm)
    x_flat = jnp.pad(x_flat, ((0, B_pad - B), (0, 0)))

    w01, b01, w2, b2, wh, bh, sum_mat = _prepare_params(params)

    def row_spec(cols):
        return pl.BlockSpec((tm, cols), lambda i: (i, 0))

    def resident_spec(shape):
        # full-array block, constant index -> weights stay resident across grid
        return pl.BlockSpec(shape, lambda i: (0, 0))

    out = pl.pallas_call(
        harmonization_kernel,
        out_shape=jax.ShapeDtypeStruct((B_pad, FUSED_WIDTH), jnp.float32),
        grid_spec=pltpu.PrefetchScalarGridSpec(
            num_scalar_prefetch=0,
            grid=(B_pad // tm,),
            in_specs=[
                row_spec(d_in),
                resident_spec(w01.shape), resident_spec(b01.shape),
                resident_spec(w2.shape), resident_spec(b2.shape),
                resident_spec(wh.shape), resident_spec(bh.shape),
                resident_spec(sum_mat.shape),
            ],
            out_specs=row_spec(FUSED_WIDTH),
        ),
        compiler_params=pltpu.CompilerParams(
            dimension_semantics=("parallel",)),
    )(x_flat, w01, b01, w2, b2, wh, bh, sum_mat)

    out = out[:B]
    heads = []
    for blk, n_class in enumerate(HEAD_CLASSES):
        heads.append(out[:, blk * HEAD_WIDTH:(blk + 1) * HEAD_WIDTH]
                     .reshape(B, n_class, SEQUENCE_LENGTH))
    return tuple(heads)


def init_params(key):
    """Deterministic PyTorch-nn.Linear-style init. Weights stored as (in, out)."""
    def linear(k, fan_in, fan_out):
        k1, k2 = jax.random.split(k)
        bound = 1.0 / (fan_in ** 0.5)
        w = jax.random.uniform(k1, (fan_in, fan_out), jnp.float32, -bound, bound)
        b = jax.random.uniform(k2, (1, fan_out), jnp.float32, -bound, bound)
        return w, b

    ks = jax.random.split(key, 6)
    d_in = SEQUENCE_LENGTH * SOPRANO_CLASS_NUMBER
    wi, bi = linear(ks[0], d_in, HIDDEN)
    w1, b1 = linear(ks[1], HIDDEN, HIDDEN)
    w2, b2 = linear(ks[2], HIDDEN, HIDDEN)
    wa, ba = linear(ks[3], HIDDEN, SEQUENCE_LENGTH * ALTO_CLASS_NUMBER)
    wt, bt = linear(ks[4], HIDDEN, SEQUENCE_LENGTH * TENOR_CLASS_NUMBER)
    wb, bb = linear(ks[5], HIDDEN, SEQUENCE_LENGTH * BASS_CLASS_NUMBER)
    return dict(wi=wi, bi=bi, w1=w1, b1=b1, w2=w2, b2=b2,
                wa=wa, ba=ba, wt=wt, bt=bt, wb=wb, bb=bb)


def reference_forward(x, p):
    """Pure-JAX f32 reference matching the PyTorch module in eval mode."""
    B = x.shape[0]
    h = x.reshape(B, -1) @ p["wi"] + p["bi"]
    h = jnp.maximum(h @ p["w1"] + p["b1"], 0.0)
    h = jnp.maximum(h @ p["w2"] + p["b2"], 0.0)

    def head(w, b, n_class):
        z = jnp.maximum(h @ w + b, 0.0).reshape(B, n_class, SEQUENCE_LENGTH)
        return jax.nn.log_softmax(z, axis=1)

    return (head(p["wa"], p["ba"], ALTO_CLASS_NUMBER),
            head(p["wt"], p["bt"], TENOR_CLASS_NUMBER),
            head(p["wb"], p["bb"], BASS_CLASS_NUMBER))


if __name__ == "__main__":
    key = jax.random.PRNGKey(0)
    k_x, k_p = jax.random.split(key)
    x = jax.random.normal(k_x, (BATCH_SIZE, SEQUENCE_LENGTH, SOPRANO_CLASS_NUMBER),
                          dtype=jnp.float32)
    params = init_params(k_p)

    y_alto, y_tenor, y_bass = jax.block_until_ready(
        f_harmonization_forward(x, params))

    # sanity check against a pure-JAX f32 reference (kernel matmuls are bf16 +
    # fused wi@w1, so tolerance is loosened vs bit-exact parity)
    ra, rt, rb = reference_forward(x, params)
    assert y_alto.shape == (BATCH_SIZE, ALTO_CLASS_NUMBER, SEQUENCE_LENGTH)
    assert y_tenor.shape == (BATCH_SIZE, TENOR_CLASS_NUMBER, SEQUENCE_LENGTH)
    assert y_bass.shape == (BATCH_SIZE, BASS_CLASS_NUMBER, SEQUENCE_LENGTH)
    assert jnp.allclose(y_alto, ra, atol=2e-2, rtol=1e-3)
    assert jnp.allclose(y_tenor, rt, atol=2e-2, rtol=1e-3)
    assert jnp.allclose(y_bass, rb, atol=2e-2, rtol=1e-3)

    print("KERNEL_OK")
</pallas_src>

<mosaic_0001>
module attributes {stable_mosaic.version = 11 : i64} {
  func.func @harmonization_kernel(%arg0: i32, %arg1: memref<16x128xbf16, #tpu.memory_space<vmem>>, %arg2: memref<128x256xbf16, #tpu.memory_space<vmem>>, %arg3: memref<1x256xf32, #tpu.memory_space<vmem>>, %arg4: memref<256x256xbf16, #tpu.memory_space<vmem>>, %arg5: memref<1x256xf32, #tpu.memory_space<vmem>>, %arg6: memref<256x384xbf16, #tpu.memory_space<vmem>>, %arg7: memref<1x384xf32, #tpu.memory_space<vmem>>, %arg8: memref<128x128xbf16, #tpu.memory_space<vmem>>, %arg9: memref<16x384xf32, #tpu.memory_space<vmem>>) attributes {dimension_semantics = [#tpu.dimension_semantics<parallel>], iteration_bounds = array<i64: 1>, scalar_prefetch = 0 : i64, scratch_operands = 0 : i64, tpu.core_type = #tpu.core_type<tc>, window_params = [{transform_indices = @transform_0, window_bounds = array<i64: 16, 128>}, {pipeline_mode = #tpu.pipeline_mode<synchronous>, transform_indices = @transform_1, window_bounds = array<i64: 128, 256>}, {pipeline_mode = #tpu.pipeline_mode<synchronous>, transform_indices = @transform_2, window_bounds = array<i64: 1, 256>}, {pipeline_mode = #tpu.pipeline_mode<synchronous>, transform_indices = @transform_3, window_bounds = array<i64: 256, 256>}, {pipeline_mode = #tpu.pipeline_mode<synchronous>, transform_indices = @transform_4, window_bounds = array<i64: 1, 256>}, {pipeline_mode = #tpu.pipeline_mode<synchronous>, transform_indices = @transform_5, window_bounds = array<i64: 256, 384>}, {pipeline_mode = #tpu.pipeline_mode<synchronous>, transform_indices = @transform_6, window_bounds = array<i64: 1, 384>}, {pipeline_mode = #tpu.pipeline_mode<synchronous>, transform_indices = @transform_7, window_bounds = array<i64: 128, 128>}, {transform_indices = @transform_8, window_bounds = array<i64: 16, 384>}]} {
    %c0 = arith.constant 0 : index
    %c0_0 = arith.constant 0 : index
    %0 = vector.load %arg1[%c0, %c0_0] : memref<16x128xbf16, #tpu.memory_space<vmem>>, vector<16x128xbf16>
    %c0_1 = arith.constant 0 : index
    %c0_2 = arith.constant 0 : index
    %1 = vector.load %arg2[%c0_1, %c0_2] : memref<128x256xbf16, #tpu.memory_space<vmem>>, vector<128x256xbf16>
    %cst = arith.constant dense<0.000000e+00> : vector<16x256xf32>
    %2 = tpu.matmul %0, %1, %cst {dimension_numbers = #tpu.dot_dimension_numbers<[1], [0], [0], [1], [0, 0, 1, 1], [], []>} : vector<16x128xbf16>, vector<128x256xbf16>, vector<16x256xf32> -> vector<16x256xf32>
    %c0_3 = arith.constant 0 : index
    %c0_4 = arith.constant 0 : index
    %3 = vector.load %arg3[%c0_3, %c0_4] : memref<1x256xf32, #tpu.memory_space<vmem>>, vector<1x256xf32>
    %4 = vector.broadcast %3 : vector<1x256xf32> to vector<16x256xf32>
    %5 = arith.addf %2, %4 : vector<16x256xf32>
    %cst_5 = arith.constant 0.000000e+00 : f32
    %6 = vector.broadcast %cst_5 : f32 to vector<16x256xf32>
    %7 = arith.maximumf %5, %6 : vector<16x256xf32>
    %8 = arith.truncf %7 : vector<16x256xf32> to vector<16x256xbf16>
    %c0_6 = arith.constant 0 : index
    %c0_7 = arith.constant 0 : index
    %9 = vector.load %arg4[%c0_6, %c0_7] : memref<256x256xbf16, #tpu.memory_space<vmem>>, vector<256x256xbf16>
    %cst_8 = arith.constant dense<0.000000e+00> : vector<16x256xf32>
    %10 = tpu.matmul %8, %9, %cst_8 {dimension_numbers = #tpu.dot_dimension_numbers<[1], [0], [0], [1], [0, 0, 1, 1], [], []>} : vector<16x256xbf16>, vector<256x256xbf16>, vector<16x256xf32> -> vector<16x256xf32>
    %c0_9 = arith.constant 0 : index
    %c0_10 = arith.constant 0 : index
    %11 = vector.load %arg5[%c0_9, %c0_10] : memref<1x256xf32, #tpu.memory_space<vmem>>, vector<1x256xf32>
    %12 = vector.broadcast %11 : vector<1x256xf32> to vector<16x256xf32>
    %13 = arith.addf %10, %12 : vector<16x256xf32>
    %cst_11 = arith.constant 0.000000e+00 : f32
    %14 = vector.broadcast %cst_11 : f32 to vector<16x256xf32>
    %15 = arith.maximumf %13, %14 : vector<16x256xf32>
    %16 = arith.truncf %15 : vector<16x256xf32> to vector<16x256xbf16>
    %c0_12 = arith.constant 0 : index
    %c0_13 = arith.constant 0 : index
    %17 = vector.load %arg6[%c0_12, %c0_13] : memref<256x384xbf16, #tpu.memory_space<vmem>>, vector<256x384xbf16>
    %cst_14 = arith.constant dense<0.000000e+00> : vector<16x384xf32>
    %18 = tpu.matmul %16, %17, %cst_14 {dimension_numbers = #tpu.dot_dimension_numbers<[1], [0], [0], [1], [0, 0, 1, 1], [], []>} : vector<16x256xbf16>, vector<256x384xbf16>, vector<16x384xf32> -> vector<16x384xf32>
    %c0_15 = arith.constant 0 : index
    %c0_16 = arith.constant 0 : index
    %19 = vector.load %arg7[%c0_15, %c0_16] : memref<1x384xf32, #tpu.memory_space<vmem>>, vector<1x384xf32>
    %20 = vector.broadcast %19 : vector<1x384xf32> to vector<16x384xf32>
    %21 = arith.addf %18, %20 : vector<16x384xf32>
    %cst_17 = arith.constant 0.000000e+00 : f32
    %22 = vector.broadcast %cst_17 : f32 to vector<16x384xf32>
    %23 = arith.maximumf %21, %22 : vector<16x384xf32>
    %24 = vector.extract_strided_slice %23 {offsets = [0, 0], sizes = [16, 128], strides = [1, 1]} : vector<16x384xf32> to vector<16x128xf32>
    %c8_i32 = arith.constant 8 : i32
    %25 = tpu.dynamic_rotate %24 by %c8_i32 dim 1 : vector<16x128xf32>, i32 -> vector<16x128xf32>
    %26 = arith.maximumf %24, %25 : vector<16x128xf32>
    %c16_i32 = arith.constant 16 : i32
    %27 = tpu.dynamic_rotate %26 by %c16_i32 dim 1 : vector<16x128xf32>, i32 -> vector<16x128xf32>
    %28 = arith.maximumf %26, %27 : vector<16x128xf32>
    %c32_i32 = arith.constant 32 : i32
    %29 = tpu.dynamic_rotate %28 by %c32_i32 dim 1 : vector<16x128xf32>, i32 -> vector<16x128xf32>
    %30 = arith.maximumf %28, %29 : vector<16x128xf32>
    %c64_i32 = arith.constant 64 : i32
    %31 = tpu.dynamic_rotate %30 by %c64_i32 dim 1 : vector<16x128xf32>, i32 -> vector<16x128xf32>
    %32 = arith.maximumf %30, %31 : vector<16x128xf32>
    %33 = arith.subf %24, %32 : vector<16x128xf32>
    %34 = math.exp %33 : vector<16x128xf32>
    %35 = arith.truncf %34 : vector<16x128xf32> to vector<16x128xbf16>
    %c0_18 = arith.constant 0 : index
    %c0_19 = arith.constant 0 : index
    %36 = vector.load %arg8[%c0_18, %c0_19] : memref<128x128xbf16, #tpu.memory_space<vmem>>, vector<128x128xbf16>
    %cst_20 = arith.constant dense<0.000000e+00> : vector<16x128xf32>
    %37 = tpu.matmul %35, %36, %cst_20 {dimension_numbers = #tpu.dot_dimension_numbers<[1], [0], [0], [1], [0, 0, 1, 1], [], []>} : vector<16x128xbf16>, vector<128x128xbf16>, vector<16x128xf32> -> vector<16x128xf32>
    %38 = arith.subf %24, %32 : vector<16x128xf32>
    %39 = math.log %37 : vector<16x128xf32>
    %40 = arith.subf %38, %39 : vector<16x128xf32>
    %c0_21 = arith.constant 0 : index
    %c0_22 = arith.constant 0 : index
    %41 = vector.load %arg9[%c0_21, %c0_22] : memref<16x384xf32, #tpu.memory_space<vmem>>, vector<16x128xf32>
    tpu.vector_store %arg9[%c0_21, %c0_22], %40 {strides = array<i32>} : memref<16x384xf32, #tpu.memory_space<vmem>>, vector<16x128xf32>,
    %42 = vector.extract_strided_slice %23 {offsets = [0, 128], sizes = [16, 128], strides = [1, 1]} : vector<16x384xf32> to vector<16x128xf32>
    %c8_i32_23 = arith.constant 8 : i32
    %43 = tpu.dynamic_rotate %42 by %c8_i32_23 dim 1 : vector<16x128xf32>, i32 -> vector<16x128xf32>
    %44 = arith.maximumf %42, %43 : vector<16x128xf32>
    %c16_i32_24 = arith.constant 16 : i32
    %45 = tpu.dynamic_rotate %44 by %c16_i32_24 dim 1 : vector<16x128xf32>, i32 -> vector<16x128xf32>
    %46 = arith.maximumf %44, %45 : vector<16x128xf32>
    %c32_i32_25 = arith.constant 32 : i32
    %47 = tpu.dynamic_rotate %46 by %c32_i32_25 dim 1 : vector<16x128xf32>, i32 -> vector<16x128xf32>
    %48 = arith.maximumf %46, %47 : vector<16x128xf32>
    %c64_i32_26 = arith.constant 64 : i32
    %49 = tpu.dynamic_rotate %48 by %c64_i32_26 dim 1 : vector<16x128xf32>, i32 -> vector<16x128xf32>
    %50 = arith.maximumf %48, %49 : vector<16x128xf32>
    %51 = arith.subf %42, %50 : vector<16x128xf32>
    %52 = math.exp %51 : vector<16x128xf32>
    %53 = arith.truncf %52 : vector<16x128xf32> to vector<16x128xbf16>
    %c0_27 = arith.constant 0 : index
    %c0_28 = arith.constant 0 : index
    %54 = vector.load %arg8[%c0_27, %c0_28] : memref<128x128xbf16, #tpu.memory_space<vmem>>, vector<128x128xbf16>
    %cst_29 = arith.constant dense<0.000000e+00> : vector<16x128xf32>
    %55 = tpu.matmul %53, %54, %cst_29 {dimension_numbers = #tpu.dot_dimension_numbers<[1], [0], [0], [1], [0, 0, 1, 1], [], []>} : vector<16x128xbf16>, vector<128x128xbf16>, vector<16x128xf32> -> vector<16x128xf32>
    %56 = arith.subf %42, %50 : vector<16x128xf32>
    %57 = math.log %55 : vector<16x128xf32>
    %58 = arith.subf %56, %57 : vector<16x128xf32>
    %c0_30 = arith.constant 0 : index
    %c128 = arith.constant 128 : index
    %59 = vector.load %arg9[%c0_30, %c128] : memref<16x384xf32, #tpu.memory_space<vmem>>, vector<16x128xf32>
    tpu.vector_store %arg9[%c0_30, %c128], %58 {strides = array<i32>} : memref<16x384xf32, #tpu.memory_space<vmem>>, vector<16x128xf32>,
    %60 = vector.extract_strided_slice %23 {offsets = [0, 256], sizes = [16, 128], strides = [1, 1]} : vector<16x384xf32> to vector<16x128xf32>
    %c8_i32_31 = arith.constant 8 : i32
    %61 = tpu.dynamic_rotate %60 by %c8_i32_31 dim 1 : vector<16x128xf32>, i32 -> vector<16x128xf32>
    %62 = arith.maximumf %60, %61 : vector<16x128xf32>
    %c16_i32_32 = arith.constant 16 : i32
    %63 = tpu.dynamic_rotate %62 by %c16_i32_32 dim 1 : vector<16x128xf32>, i32 -> vector<16x128xf32>
    %64 = arith.maximumf %62, %63 : vector<16x128xf32>
    %c32_i32_33 = arith.constant 32 : i32
    %65 = tpu.dynamic_rotate %64 by %c32_i32_33 dim 1 : vector<16x128xf32>, i32 -> vector<16x128xf32>
    %66 = arith.maximumf %64, %65 : vector<16x128xf32>
    %c64_i32_34 = arith.constant 64 : i32
    %67 = tpu.dynamic_rotate %66 by %c64_i32_34 dim 1 : vector<16x128xf32>, i32 -> vector<16x128xf32>
    %68 = arith.maximumf %66, %67 : vector<16x128xf32>
    %69 = arith.subf %60, %68 : vector<16x128xf32>
    %70 = math.exp %69 : vector<16x128xf32>
    %71 = arith.truncf %70 : vector<16x128xf32> to vector<16x128xbf16>
    %c0_35 = arith.constant 0 : index
    %c0_36 = arith.constant 0 : index
    %72 = vector.load %arg8[%c0_35, %c0_36] : memref<128x128xbf16, #tpu.memory_space<vmem>>, vector<128x128xbf16>
    %cst_37 = arith.constant dense<0.000000e+00> : vector<16x128xf32>
    %73 = tpu.matmul %71, %72, %cst_37 {dimension_numbers = #tpu.dot_dimension_numbers<[1], [0], [0], [1], [0, 0, 1, 1], [], []>} : vector<16x128xbf16>, vector<128x128xbf16>, vector<16x128xf32> -> vector<16x128xf32>
    %74 = arith.subf %60, %68 : vector<16x128xf32>
    %75 = math.log %73 : vector<16x128xf32>
    %76 = arith.subf %74, %75 : vector<16x128xf32>
    %c0_38 = arith.constant 0 : index
    %c256 = arith.constant 256 : index
    %77 = vector.load %arg9[%c0_38, %c256] : memref<16x384xf32, #tpu.memory_space<vmem>>, vector<16x128xf32>
    tpu.vector_store %arg9[%c0_38, %c256], %76 {strides = array<i32>} : memref<16x384xf32, #tpu.memory_space<vmem>>, vector<16x128xf32>,
    return
  }
  func.func @transform_0(%arg0: i32) -> (i32, i32) {
    %c0_i32 = arith.constant 0 : i32
    %c0_i32_0 = arith.constant 0 : i32
    return %arg0, %c0_i32 : i32, i32
  }
  func.func @transform_1(%arg0: i32) -> (i32, i32) {
    %c0_i32 = arith.constant 0 : i32
    %c0_i32_0 = arith.constant 0 : i32
    %c0_i32_1 = arith.constant 0 : i32
    return %c0_i32, %c0_i32_0 : i32, i32
  }
  func.func @transform_2(%arg0: i32) -> (i32, i32) {
    %c0_i32 = arith.constant 0 : i32
    %c0_i32_0 = arith.constant 0 : i32
    %c0_i32_1 = arith.constant 0 : i32
    return %c0_i32, %c0_i32_0 : i32, i32
  }
  func.func @transform_3(%arg0: i32) -> (i32, i32) {
    %c0_i32 = arith.constant 0 : i32
    %c0_i32_0 = arith.constant 0 : i32
    %c0_i32_1 = arith.constant 0 : i32
    return %c0_i32, %c0_i32_0 : i32, i32
  }
  func.func @transform_4(%arg0: i32) -> (i32, i32) {
    %c0_i32 = arith.constant 0 : i32
    %c0_i32_0 = arith.constant 0 : i32
    %c0_i32_1 = arith.constant 0 : i32
    return %c0_i32, %c0_i32_0 : i32, i32
  }
  func.func @transform_5(%arg0: i32) -> (i32, i32) {
    %c0_i32 = arith.constant 0 : i32
    %c0_i32_0 = arith.constant 0 : i32
    %c0_i32_1 = arith.constant 0 : i32
    return %c0_i32, %c0_i32_0 : i32, i32
  }
  func.func @transform_6(%arg0: i32) -> (i32, i32) {
    %c0_i32 = arith.constant 0 : i32
    %c0_i32_0 = arith.constant 0 : i32
    %c0_i32_1 = arith.constant 0 : i32
    return %c0_i32, %c0_i32_0 : i32, i32
  }
  func.func @transform_7(%arg0: i32) -> (i32, i32) {
    %c0_i32 = arith.constant 0 : i32
    %c0_i32_0 = arith.constant 0 : i32
    %c0_i32_1 = arith.constant 0 : i32
    return %c0_i32, %c0_i32_0 : i32, i32
  }
  func.func @transform_8(%arg0: i32) -> (i32, i32) {
    %c0_i32 = arith.constant 0 : i32
    %c0_i32_0 = arith.constant 0 : i32
    return %arg0, %c0_i32 : i32, i32
  }
}

</mosaic_0001>

<bundles_post_ra>
// kernel: tpu_custom_call.1
= control target key start
LH: loop header
LB: loop body
LE: loop exit
PB: predicated region body
PF: predicated region fallthrough
CT: control target
= control target key end

     0   :  { %13 = vsyncpa [#allocation3], 0  ;;  %s2237_s0 = inlined_call_operand.hbm [shape: bf16[16,128], index: 0, kind: input, shape index: {}]   ;;  %s2238_s1 = inlined_call_operand.hbm [shape: bf16[128,256], index: 1, kind: input, shape index: {}]   ;;  %s2239_s2 = inlined_call_operand.vmem [shape: f32[1,256], index: 2, kind: input, shape index: {}]   ;;  %s2240_s3 = inlined_call_operand.hbm [shape: bf16[256,256], index: 3, kind: input, shape index: {}]   ;;  %s2241_s4 = inlined_call_operand.vmem [shape: f32[1,256], index: 4, kind: input, shape index: {}]   ;;  %s2242_s5 = inlined_call_operand.hbm [shape: bf16[256,384], index: 5, kind: input, shape index: {}]   ;;  %s2243_s6 = inlined_call_operand.vmem [shape: f32[1,384], index: 6, kind: input, shape index: {}]   ;;  %s2244_s7 = inlined_call_operand.hbm [shape: bf16[128,128], index: 7, kind: input, shape index: {}]   ;;  %s2245_s8 = inlined_call_operand.hbm [shape: f32[16,384], index: 8, kind: output, shape index: {}]  }
   0x1   :  { %14 = vsyncpa [#allocation6], 0 }
   0x2   :  { %15 = vsyncpa [#allocation9], 0 }
   0x3   :  { %16 = vsyncpa [#allocation4], 0  ;;  %s1969_s27 = smov [#allocation5]   ;;  %s1829_s9 = scalar_lea.hbm %s2238_s1, 2048 }
   0x4   :  { %s34_s28 = sshll.u32 %s1969_s27, 4  ;;  %p1830_p0 = scmp.ne.s32.totalorder %s2238_s1, %s1829_s9  ;;  %s35_s28 = int_to_ptr.vmem [resolvable:$true] %s34_s28 }
   0x5   :  { %p1833_p1 = scmp.lt.u32.totalorder %s1829_s9, %s2238_s1 }
   0x7   :  { %p1835_p2 = pnand %p1833_p1, %p1830_p0 }
   0x9   :  { %1838 = shalt.err (!%p1835_p2)
}
   0xa   :  { %s1839_s14 = scalar_lea.vmem %s35_s28, 2048  ;;  %p1844_p4 = scmp.lt.s32.totalorder %s35_s28, %s35_s28 }
   0xb   :  { %p1840_p3 = scmp.ne.s32.totalorder %s35_s28, %s1839_s14  ;;  %p1845_p5 = scmp.lt.s32.totalorder %s1839_s14, %s1839_s14 }
   0xd   :  { %p1846_p6 = por %p1845_p5, %p1844_p4 }
   0xf   :  { %p1847_p7 = pnand %p1846_p6, %p1840_p3 }
  0x11   :  { %1850 = shalt.err (!%p1847_p7)
}
  0x12   :  { %s1970_s15 = smov 128   ;;  %s1971_s16 = smov 8  }
  0x13   :  { %40 = dma.hbm_to_vmem [thread:$0]  %s2238_s1, 2048, %s35_s28, [#allocation6], %s1970_s15, %s1970_s15, %s1971_s16  }
  0x14   :  { %s1972_s19 = smov [#allocation8]   ;;  %s1851_s23 = scalar_lea.hbm %s2242_s5, 6144 }
  0x15   :  { %s62_s20 = sshll.u32 %s1972_s19, 4  ;;  %p1852_p8 = scmp.ne.s32.totalorder %s2242_s5, %s1851_s23  ;;  %s63_s20 = int_to_ptr.vmem [resolvable:$true] %s62_s20 }
  0x16   :  { %p1855_p9 = scmp.lt.u32.totalorder %s1851_s23, %s2242_s5 }
  0x18   :  { %p1857_p10 = pnand %p1855_p9, %p1852_p8 }
  0x1a   :  { %1860 = shalt.err (!%p1857_p10)
}
  0x1b   :  { %s1861_s29 = scalar_lea.vmem %s63_s20, 6144  ;;  %p1866_p12 = scmp.lt.s32.totalorder %s63_s20, %s63_s20 }
  0x1c   :  { %p1862_p11 = scmp.ne.s32.totalorder %s63_s20, %s1861_s29  ;;  %p1867_p13 = scmp.lt.s32.totalorder %s1861_s29, %s1861_s29 }
  0x1e   :  { %p1868_p0 = por %p1867_p13, %p1866_p12 }
  0x20   :  { %p1869_p1 = pnand %p1868_p0, %p1862_p11 }
  0x22   :  { %1872 = shalt.err (!%p1869_p1)
}
  0x23   :  { %s1973_s1 = smov 192   ;;  %s1974_s28 = smov 12  }
  0x24   :  { %68 = dma.hbm_to_vmem [thread:$0]  %s2242_s5, 6144, %s63_s20, [#allocation9], %s1973_s1, %s1973_s1, %s1974_s28  }
  0x25   :  { %s1975_s10 = smov [#allocation2]   ;;  %s1873_s14 = scalar_lea.hbm %s2237_s0, 128 }
  0x26   :  { %s22_s11 = sshll.u32 %s1975_s10, 4  ;;  %p1874_p2 = scmp.ne.s32.totalorder %s2237_s0, %s1873_s14  ;;  %s23_s11 = int_to_ptr.vmem [resolvable:$true] %s22_s11 }
  0x27   :  { %p1877_p3 = scmp.lt.u32.totalorder %s1873_s14, %s2237_s0 }
  0x29   :  { %p1879_p4 = pnand %p1877_p3, %p1874_p2 }
  0x2b   :  { %1882 = shalt.err (!%p1879_p4)
}
  0x2c   :  { %s1883_s22 = scalar_lea.vmem %s23_s11, 128  ;;  %p1888_p6 = scmp.lt.s32.totalorder %s23_s11, %s23_s11 }
  0x2d   :  { %p1884_p5 = scmp.ne.s32.totalorder %s23_s11, %s1883_s22  ;;  %p1889_p7 = scmp.lt.s32.totalorder %s1883_s22, %s1883_s22 }
  0x2f   :  { %p1890_p8 = por %p1889_p7, %p1888_p6 }
  0x31   :  { %p1891_p9 = pnand %p1890_p8, %p1884_p5 }
  0x33   :  { %1894 = shalt.err (!%p1891_p9)
}
  0x34   :  { %s1976_s5 = smov 64   ;;  %s1977_s20 = smov 4  }
  0x35   :  { %28 = dma.hbm_to_vmem [thread:$0]  %s2237_s0, 128, %s23_s11, [#allocation3], %s1976_s5, %s1976_s5, %s1977_s20  }
  0x36   :  { %s1978_s25 = smov [#allocation7]   ;;  %s1979_s27 = smov [#allocation10]  }
  0x37   :  { %s48_s26 = sshll.u32 %s1978_s25, 4  ;;  %s76_s29 = sshll.u32 %s1979_s27, 4  ;;  %s49_s26 = int_to_ptr.vmem [resolvable:$true] %s48_s26  ;;  %s77_s29 = int_to_ptr.vmem [resolvable:$true] %s76_s29 }
  0x38   :  { %s1895_s30 = scalar_lea.hbm %s2240_s3, 4096 }
  0x39   :  { %p1896_p10 = scmp.ne.s32.totalorder %s2240_s3, %s1895_s30  ;;  %p1899_p11 = scmp.lt.u32.totalorder %s1895_s30, %s2240_s3 }
  0x3b   :  { %p1901_p12 = pnand %p1899_p11, %p1896_p10 }
  0x3d   :  { %1904 = shalt.err (!%p1901_p12)
}
  0x3e   :  { %s1905_s0 = scalar_lea.vmem %s49_s26, 4096  ;;  %p1910_p0 = scmp.lt.s32.totalorder %s49_s26, %s49_s26 }
  0x3f   :  { %p1906_p13 = scmp.ne.s32.totalorder %s49_s26, %s1905_s0  ;;  %p1911_p1 = scmp.lt.s32.totalorder %s1905_s0, %s1905_s0 }
  0x41   :  { %p1912_p2 = por %p1911_p1, %p1910_p0 }
  0x43   :  { %p1913_p3 = pnand %p1912_p2, %p1906_p13 }
  0x45   :  { %1916 = shalt.err (!%p1913_p3)
}
  0x46   :  { %54 = dma.hbm_to_vmem [thread:$0]  %s2240_s3, 4096, %s49_s26, [#allocation6], %s1970_s15, %s1970_s15, %s1971_s16  }
  0x47   :  { %s1917_s19 = scalar_lea.hbm %s2244_s7, 1024 }
  0x48   :  { %p1918_p4 = scmp.ne.s32.totalorder %s2244_s7, %s1917_s19  ;;  %p1921_p5 = scmp.lt.u32.totalorder %s1917_s19, %s2244_s7 }
  0x4a   :  { %p1923_p6 = pnand %p1921_p5, %p1918_p4 }
  0x4c   :  { %1926 = shalt.err (!%p1923_p6)
}
  0x4d   :  { %s1927_s25 = scalar_lea.vmem %s77_s29, 1024  ;;  %p1932_p8 = scmp.lt.s32.totalorder %s77_s29, %s77_s29 }
  0x4e   :  { %p1928_p7 = scmp.ne.s32.totalorder %s77_s29, %s1927_s25  ;;  %p1933_p9 = scmp.lt.s32.totalorder %s1927_s25, %s1927_s25 }
  0x50   :  { %p1934_p10 = por %p1933_p9, %p1932_p8 }
  0x52   :  { %p1935_p11 = pnand %p1934_p10, %p1928_p7 }
  0x54   :  { %1938 = shalt.err (!%p1935_p11)
}
  0x55   :  { %82 = dma.hbm_to_vmem [thread:$0]  %s2244_s7, 1024, %s77_s29, [#allocation9], %s1976_s5, %s1976_s5, %s1977_s20  }
  0x56   :  { %1961 = dma.done.wait [#allocation3], 128  }
  0x57   :  { %1962 = vsyncadd [#allocation3], 4294967168 }
  0x58   :  { %1963 = dma.done.wait [#allocation6], 6144  }
  0x59   :  { %1964 = vsyncadd [#allocation6], 4294961152 }
  0x5a   :  { %1965 = dma.done.wait [#allocation9], 7168  }
  0x5b   :  { %1966 = vsyncadd [#allocation9], 4294960128  ;;  %v1980_v0 = vmov 0   ;;  %v1644_v1 = vld [vmem:[#allocation5 + $0x4] ss:$8 sps:$4 sm:$0xff]   ;;  %v1668_v27 = vld [vmem:[#allocation2] sm:$0xff]  }
  0x5c   :  { %247 = vmatprep.mubr.bf16.mxu0 %v1980_v0  ;;  %v1646_v2 = vld [vmem:[#allocation5] ss:$8 sps:$4 sm:$0xff]   ;;  %215 = vmatprep.subr.bf16.mxu0 %v1644_v1  ;;  %v1647_v3 = vld [vmem:[#allocation5 + $0x14] ss:$8 sps:$4 sm:$0xff]   ;;  %v1649_v4 = vld [vmem:[#allocation5 + $0x10] ss:$8 sps:$4 sm:$0xff]  }
  0x5d   :  { %216 = vmatpush1.bf16.msra.mxu0 %v1646_v2  ;;  %v1650_v5 = vld [vmem:[#allocation5 + $0x24] ss:$8 sps:$4 sm:$0xff]   ;;  %v1652_v6 = vld [vmem:[#allocation5 + $0x20] ss:$8 sps:$4 sm:$0xff]   ;;  %v1653_v7 = vld [vmem:[#allocation5 + $0x34] ss:$8 sps:$4 sm:$0xff]  }
  0x5e   :  { %217 = vmatprep.subr.bf16.mxu0 %v1647_v3  ;;  %v1655_v8 = vld [vmem:[#allocation5 + $0x30] ss:$8 sps:$4 sm:$0xff]   ;;  %v1656_v9 = vld [vmem:[#allocation5 + $0x44] ss:$8 sps:$4 sm:$0xff]   ;;  %v1671_v11 = vld [vmem:[#allocation7] ss:$8 sps:$4 sm:$0xff]  }
  0x5f   :  { %v1669_v10 = vld [vmem:[#allocation7 + $0x4] ss:$8 sps:$4 sm:$0xff]   ;;  %v1672_v12 = vld [vmem:[#allocation7 + $0x14] ss:$8 sps:$4 sm:$0xff]   ;;  %v1658_v13 = vld [vmem:[#allocation5 + $0x40] ss:$8 sps:$4 sm:$0xff]  }
  0x60   :  { %468 = vmatprep.subr.bf16.mxu1 %v1669_v10  ;;  %v1674_v14 = vld [vmem:[#allocation7 + $0x10] ss:$8 sps:$4 sm:$0xff]   ;;  %v1659_v15 = vld [vmem:[#allocation5 + $0x54] ss:$8 sps:$4 sm:$0xff]   ;;  %v1675_v16 = vld [vmem:[#allocation7 + $0x24] ss:$8 sps:$4 sm:$0xff]  }
  0x61   :  { %218 = vmatpush1.bf16.msra.mxu0 %v1649_v4  ;;  %469 = vmatpush1.bf16.msra.mxu1 %v1671_v11  ;;  %v1661_v17 = vld [vmem:[#allocation5 + $0x50] ss:$8 sps:$4 sm:$0xff]   ;;  %v1677_v18 = vld [vmem:[#allocation7 + $0x20] ss:$8 sps:$4 sm:$0xff]   ;;  %v1662_v19 = vld [vmem:[#allocation5 + $0x64] ss:$8 sps:$4 sm:$0xff]  }
  0x62   :  { %219 = vmatprep.subr.bf16.mxu0 %v1650_v5  ;;  %470 = vmatprep.subr.bf16.mxu1 %v1672_v12  ;;  %v1678_v20 = vld [vmem:[#allocation7 + $0x34] ss:$8 sps:$4 sm:$0xff]   ;;  %v1664_v21 = vld [vmem:[#allocation5 + $0x60] ss:$8 sps:$4 sm:$0xff]   ;;  %v1680_v22 = vld [vmem:[#allocation7 + $0x30] ss:$8 sps:$4 sm:$0xff]  }
  0x63   :  { %v1665_v23 = vld [vmem:[#allocation5 + $0x74] ss:$8 sps:$4 sm:$0xff]   ;;  %v1681_v24 = vld [vmem:[#allocation7 + $0x44] ss:$8 sps:$4 sm:$0xff]   ;;  %v1667_v25 = vld [vmem:[#allocation5 + $0x70] ss:$8 sps:$4 sm:$0xff]  }
  0x64   :  { %v1683_v26 = vld [vmem:[#allocation7 + $0x40] ss:$8 sps:$4 sm:$0xff]   ;;  %v1684_v28 = vld [vmem:[#allocation7 + $0x54] ss:$8 sps:$4 sm:$0xff]   ;;  %v1686_v29 = vld [vmem:[#allocation7 + $0x50] ss:$8 sps:$4 sm:$0xff]  }
  0x65   :  { %220 = vmatpush1.bf16.msra.mxu0 %v1652_v6  ;;  %471 = vmatpush1.bf16.msra.mxu1 %v1674_v14  ;;  %v1687_v30 = vld [vmem:[#allocation7 + $0x64] ss:$8 sps:$4 sm:$0xff]   ;;  %v1689_v31 = vld [vmem:[#allocation7 + $0x60] ss:$8 sps:$4 sm:$0xff]   ;;  %v1690_v32 = vld [vmem:[#allocation7 + $0x74] ss:$8 sps:$4 sm:$0xff]  }
  0x66   :  { %221 = vmatprep.subr.bf16.mxu0 %v1653_v7  ;;  %472 = vmatprep.subr.bf16.mxu1 %v1675_v16  ;;  %v1692_v33 = vld [vmem:[#allocation7 + $0x70] ss:$8 sps:$4 sm:$0xff]   ;;  %v1693_v34 = vld [vmem:[#allocation7 + $0x84] ss:$8 sps:$4 sm:$0xff]   ;;  %v1695_v35 = vld [vmem:[#allocation7 + $0x80] ss:$8 sps:$4 sm:$0xff]  }
  0x67   :  { %v1696_v36 = vld [vmem:[#allocation7 + $0x94] ss:$8 sps:$4 sm:$0xff]   ;;  %v1698_v37 = vld [vmem:[#allocation7 + $0x90] ss:$8 sps:$4 sm:$0xff]   ;;  %v1699_v38 = vld [vmem:[#allocation7 + $0xa4] ss:$8 sps:$4 sm:$0xff]  }
  0x68   :  { %v1701_v39 = vld [vmem:[#allocation7 + $0xa0] ss:$8 sps:$4 sm:$0xff]   ;;  %v1702_v40 = vld [vmem:[#allocation7 + $0xb4] ss:$8 sps:$4 sm:$0xff]   ;;  %v1704_v41 = vld [vmem:[#allocation7 + $0xb0] ss:$8 sps:$4 sm:$0xff]  }
  0x69   :  { %222 = vmatpush1.bf16.msra.mxu0 %v1655_v8  ;;  %473 = vmatpush1.bf16.msra.mxu1 %v1677_v18  ;;  %v1705_v42 = vld [vmem:[#allocation7 + $0xc4] ss:$8 sps:$4 sm:$0xff]   ;;  %v1707_v43 = vld [vmem:[#allocation7 + $0xc0] ss:$8 sps:$4 sm:$0xff]   ;;  %v1708_v44 = vld [vmem:[#allocation7 + $0xd4] ss:$8 sps:$4 sm:$0xff]  }
  0x6a   :  { %223 = vmatprep.subr.bf16.mxu0 %v1656_v9  ;;  %474 = vmatprep.subr.bf16.mxu1 %v1678_v20  ;;  %v1710_v45 = vld [vmem:[#allocation7 + $0xd0] ss:$8 sps:$4 sm:$0xff]   ;;  %v1711_v46 = vld [vmem:[#allocation7 + $0xe4] ss:$8 sps:$4 sm:$0xff]   ;;  %v1713_v47 = vld [vmem:[#allocation7 + $0xe0] ss:$8 sps:$4 sm:$0xff]  }
  0x6b   :  { %v1714_v48 = vld [vmem:[#allocation7 + $0xf4] ss:$8 sps:$4 sm:$0xff]   ;;  %v1716_v49 = vld [vmem:[#allocation7 + $0xf0] ss:$8 sps:$4 sm:$0xff]   ;;  %v1717_v50 = vld [vmem:[#allocation8] ss:$12 sps:$4 sm:$0xff]  }
  0x6c   :  { %v1719_v51 = vld [vmem:[#allocation8 + $0x4] ss:$12 sps:$4 sm:$0xff]   ;;  %v1722_v52 = vld [vmem:[#allocation8 + $0x1c] ss:$12 sps:$4 sm:$0xff]   ;;  %v1725_v54 = vld [vmem:[#allocation8 + $0x34] ss:$12 sps:$4 sm:$0xff]  }
  0x6d   :  { %224 = vmatpush1.bf16.msra.mxu0 %v1658_v13  ;;  %475 = vmatpush1.bf16.msra.mxu1 %v1680_v22  ;;  %v1720_v53 = vld [vmem:[#allocation8 + $0x18] ss:$12 sps:$4 sm:$0xff]   ;;  %v1744_v55 = vld [vmem:[#allocation8 + $0xc8] ss:$12 sps:$4 sm:$0xff]   ;;  %v1723_v56 = vld [vmem:[#allocation8 + $0x30] ss:$12 sps:$4 sm:$0xff]  }
  0x6e   :  { %225 = vmatprep.subr.bf16.mxu0 %v1659_v15  ;;  %476 = vmatprep.subr.bf16.mxu1 %v1681_v24  ;;  %v1728_v57 = vld [vmem:[#allocation8 + $0x4c] ss:$12 sps:$4 sm:$0xff]   ;;  %v1726_v58 = vld [vmem:[#allocation8 + $0x48] ss:$12 sps:$4 sm:$0xff]   ;;  %v1731_v59 = vld [vmem:[#allocation8 + $0x64] ss:$12 sps:$4 sm:$0xff]   ;;  %v119_v15 = vlaneseq }
  0x6f   :  { %v1729_v60 = vld [vmem:[#allocation8 + $0x60] ss:$12 sps:$4 sm:$0xff]   ;;  %v1734_v61 = vld [vmem:[#allocation8 + $0x7c] ss:$12 sps:$4 sm:$0xff]   ;;  %v1732_v62 = vld [vmem:[#allocation8 + $0x78] ss:$12 sps:$4 sm:$0xff]  }
  0x70   :  { %v1737_v63 = vld [vmem:[#allocation8 + $0x94] ss:$12 sps:$4 sm:$0xff]   ;;  %v1735_v0 = vld [vmem:[#allocation8 + $0x90] ss:$12 sps:$4 sm:$0xff]   ;;  %v1740_v1 = vld [vmem:[#allocation8 + $0xac] ss:$12 sps:$4 sm:$0xff]  }
  0x71   :  { %226 = vmatpush1.bf16.msra.mxu0 %v1661_v17  ;;  %477 = vmatpush1.bf16.msra.mxu1 %v1683_v26  ;;  %v1738_v2 = vld [vmem:[#allocation8 + $0xa8] ss:$12 sps:$4 sm:$0xff]   ;;  %v1743_v3 = vld [vmem:[#allocation8 + $0xc4] ss:$12 sps:$4 sm:$0xff]   ;;  %v1741_v4 = vld [vmem:[#allocation8 + $0xc0] ss:$12 sps:$4 sm:$0xff]  }
  0x72   :  { %227 = vmatprep.subr.bf16.mxu0 %v1662_v19  ;;  %478 = vmatprep.subr.bf16.mxu1 %v1684_v28  ;;  %v1748_v5 = vld [vmem:[#allocation8 + $0xdc] ss:$12 sps:$4 sm:$0xff]   ;;  %v1746_v6 = vld [vmem:[#allocation8 + $0xd8] ss:$12 sps:$4 sm:$0xff]   ;;  %v1753_v7 = vld [vmem:[#allocation8 + $0xf4] ss:$12 sps:$4 sm:$0xff]  }
  0x73   :  { %v1751_v8 = vld [vmem:[#allocation8 + $0xf0] ss:$12 sps:$4 sm:$0xff]   ;;  %v1758_v9 = vld [vmem:[#allocation8 + $0x10c] ss:$12 sps:$4 sm:$0xff]   ;;  %v1756_v10 = vld [vmem:[#allocation8 + $0x108] ss:$12 sps:$4 sm:$0xff]  }
  0x74   :  { %v1763_v11 = vld [vmem:[#allocation8 + $0x124] ss:$12 sps:$4 sm:$0xff]   ;;  %v1761_v12 = vld [vmem:[#allocation8 + $0x120] ss:$12 sps:$4 sm:$0xff]   ;;  %v1768_v13 = vld [vmem:[#allocation8 + $0x13c] ss:$12 sps:$4 sm:$0xff]  }
  0x75   :  { %228 = vmatpush1.bf16.msra.mxu0 %v1664_v21  ;;  %479 = vmatpush1.bf16.msra.mxu1 %v1686_v29  ;;  %v1766_v14 = vld [vmem:[#allocation8 + $0x138] ss:$12 sps:$4 sm:$0xff]   ;;  %v2105_v16 = vshrl.u32 %v119_v15, 7  ;;  %vm1984_vm0 = vmmov 0  }
  0x76   :  { %229 = vmatprep.subr.bf16.mxu0 %v1665_v23  ;;  %480 = vmatprep.subr.bf16.mxu1 %v1687_v30  ;;  %v117_v18 = vld [vmem:[%s2239_s2] sm:$0x3] }
  0x77   :  { %v2108_v17 = vsub.s32 0, %v2105_v16  ;;  %v2114_v19 = vsub.s32 1, %v2105_v16 }
  0x79   :  { %230 = vmatpush1.bf16.msra.mxu0 %v1667_v25  ;;  %481 = vmatpush1.bf16.msra.mxu1 %v1689_v31  ;;  %v122_v20 = vrot.slane %v117_v18, %v2108_v17  ;;  %v126_v21 = vrot.slane %v117_v18, %v2114_v19 }
  0x7a   :  { %482 = vmatprep.subr.bf16.mxu1 %v1690_v32  ;;  %854 = vmatprep.subr.bf16.mxu0 %v1719_v51  ;;  %v1778_v51 = vld [vmem:[#allocation8 + $0x16c] ss:$12 sps:$4 sm:$0xff]  }
  0x7c   :  { %248 = vmatmul.mubr.bf16.vlgmr.msra.gmra.mrb[0].mxu0 %v1668_v27 }
  0x7d   :  { %483 = vmatpush1.bf16.msra.mxu1 %v1692_v33  ;;  %855 = vmatpush1.bf16.msra.mxu0 %v1717_v50  ;;  %v1775_v50 = vld [vmem:[#allocation8 + $0x98] ss:$12 sps:$4 sm:$0xff]  }
  0x7e   :  { %484 = vmatprep.subr.bf16.mxu1 %v1693_v34  ;;  %856 = vmatprep.subr.bf16.mxu0 %v1722_v52  ;;  %v1779_v52 = vld [vmem:[#allocation8 + $0x170] ss:$12 sps:$4 sm:$0xff]  }
  0x81   :  { %485 = vmatpush1.bf16.msra.mxu1 %v1695_v35  ;;  %857 = vmatpush1.bf16.msra.mxu0 %v1720_v53  ;;  %v1776_v53 = vld [vmem:[#allocation8 + $0x168] ss:$12 sps:$4 sm:$0xff]  }
  0x82   :  { %486 = vmatprep.subr.bf16.mxu1 %v1696_v36  ;;  %858 = vmatprep.subr.bf16.mxu0 %v1725_v54  ;;  %v1745_v36 = vld [vmem:[#allocation8 + $0x8] ss:$12 sps:$4 sm:$0xff]   ;;  %v1780_v54 = vld [vmem:[#allocation8 + $0xb0] ss:$12 sps:$4 sm:$0xff]  }
  0x85   :  { %487 = vmatpush1.bf16.msra.mxu1 %v1698_v37  ;;  %859 = vmatpush1.bf16.msra.mxu0 %v1723_v56  ;;  %v1749_v37 = vld [vmem:[#allocation8 + $0xe0] ss:$12 sps:$4 sm:$0xff]  }
  0x86   :  { %488 = vmatprep.subr.bf16.mxu1 %v1699_v38  ;;  %860 = vmatprep.subr.bf16.mxu0 %v1728_v57  ;;  %v1750_v38 = vld [vmem:[#allocation8 + $0x20] ss:$12 sps:$4 sm:$0xff]  }
  0x89   :  { %489 = vmatpush1.bf16.msra.mxu1 %v1701_v39  ;;  %861 = vmatpush1.bf16.msra.mxu0 %v1726_v58  ;;  %v1754_v39 = vld [vmem:[#allocation8 + $0xf8] ss:$12 sps:$4 sm:$0xff]  }
  0x8a   :  { %490 = vmatprep.subr.bf16.mxu1 %v1702_v40  ;;  %862 = vmatprep.subr.bf16.mxu0 %v1731_v59  ;;  %v1755_v40 = vld [vmem:[#allocation8 + $0x38] ss:$12 sps:$4 sm:$0xff]  }
  0x8d   :  { %491 = vmatpush1.bf16.msra.mxu1 %v1704_v41  ;;  %863 = vmatpush1.bf16.msra.mxu0 %v1729_v60  ;;  %v1759_v41 = vld [vmem:[#allocation8 + $0x110] ss:$12 sps:$4 sm:$0xff]  }
  0x8e   :  { %492 = vmatprep.subr.bf16.mxu1 %v1705_v42  ;;  %864 = vmatprep.subr.bf16.mxu0 %v1734_v61  ;;  %v1760_v42 = vld [vmem:[#allocation8 + $0x50] ss:$12 sps:$4 sm:$0xff]  }
  0x91   :  { %493 = vmatpush1.bf16.msra.mxu1 %v1707_v43  ;;  %865 = vmatpush1.bf16.msra.mxu0 %v1732_v62  ;;  %v1764_v43 = vld [vmem:[#allocation8 + $0x128] ss:$12 sps:$4 sm:$0xff]  }
  0x92   :  { %494 = vmatprep.subr.bf16.mxu1 %v1708_v44  ;;  %866 = vmatprep.subr.bf16.mxu0 %v1737_v63  ;;  %v1765_v44 = vld [vmem:[#allocation8 + $0x68] ss:$12 sps:$4 sm:$0xff]  }
  0x95   :  { %495 = vmatpush1.bf16.msra.mxu1 %v1710_v45  ;;  %867 = vmatpush1.bf16.msra.mxu0 %v1735_v0  ;;  %v1769_v45 = vld [vmem:[#allocation8 + $0x140] ss:$12 sps:$4 sm:$0xff]  }
  0x96   :  { %496 = vmatprep.subr.bf16.mxu1 %v1711_v46  ;;  %868 = vmatprep.subr.bf16.mxu0 %v1740_v1  ;;  %v1770_v46 = vld [vmem:[#allocation8 + $0x80] ss:$12 sps:$4 sm:$0xff]  }
  0x99   :  { %497 = vmatpush1.bf16.msra.mxu1 %v1713_v47  ;;  %869 = vmatpush1.bf16.msra.mxu0 %v1738_v2  ;;  %v1773_v47 = vld [vmem:[#allocation8 + $0x154] ss:$12 sps:$4 sm:$0xff]  }
  0x9a   :  { %498 = vmatprep.subr.bf16.mxu1 %v1714_v48  ;;  %870 = vmatprep.subr.bf16.mxu0 %v1743_v3  ;;  %v1774_v48 = vld [vmem:[#allocation8 + $0x158] ss:$12 sps:$4 sm:$0xff]  }
  0x9d   :  { %499 = vmatpush1.bf16.msra.mxu1 %v1716_v49  ;;  %871 = vmatpush1.bf16.msra.mxu0 %v1741_v4  ;;  %v1771_v49 = vld [vmem:[#allocation8 + $0x150] ss:$12 sps:$4 sm:$0xff]  }
  0x9e   :  { %1516 = vmatprep.subr.bf16.mxu1 %v1744_v55  ;;  %872 = vmatprep.subr.bf16.mxu0 %v1748_v5  ;;  %v296_v55 = vld [vmem:[%s2241_s4] sm:$0x3] }
  0x9f   :  { %v301_v56 = vrot.slane %v296_v55, %v2108_v17  ;;  %v305_v57 = vrot.slane %v296_v55, %v2114_v19  ;;  %v1983_v55 = vmov 0.0  }
  0xa1   :  { %873 = vmatpush1.bf16.msra.mxu0 %v1746_v6 }
  0xa2   :  { %874 = vmatprep.subr.bf16.mxu0 %v1753_v7 }
  0xa5   :  { %875 = vmatpush1.bf16.msra.mxu0 %v1751_v8  ;;  %v581_v8 = vld [vmem:[%s2243_s6] sm:$0x7]  ;;  %s1981_s6 = smov 16  }
  0xa6   :  { %876 = vmatprep.subr.bf16.mxu0 %v1758_v9  ;;  %v586_v9 = vrot.slane %v581_v8, %v2108_v17 }
  0xa9   :  { %877 = vmatpush1.bf16.msra.mxu0 %v1756_v10  ;;  %v590_v10 = vrot.slane %v581_v8, %v2114_v19 }
  0xaa   :  { %878 = vmatprep.subr.bf16.mxu0 %v1763_v11  ;;  %v593_v11 = vsub.s32 2, %v2105_v16 }
  0xad   :  { %879 = vmatpush1.bf16.msra.mxu0 %v1761_v12 }
  0xae   :  { %880 = vmatprep.subr.bf16.mxu0 %v1768_v13 }
  0xb1   :  { %881 = vmatpush1.bf16.msra.mxu0 %v1766_v14 }
  0xb2   :  { %882 = vmatprep.subr.bf16.mxu0 %v1773_v47 }
  0xb5   :  { %883 = vmatpush1.bf16.msra.mxu0 %v1771_v49 }
  0xb6   :  { %884 = vmatprep.subr.bf16.mxu0 %v1778_v51  ;;  %v1781_v51 = vld [vmem:[#allocation10] sm:$0xff]  }
  0xb9   :  { %885 = vmatpush1.bf16.msra.mxu0 %v1776_v53 }
  0xba   :  { %1565 = vmatprep.subr.bf16.mxu0 %v1983_v55 }
 0x14f   :  { %v249_v22 = vpop.f32.mrb[0].mxu0 }
 0x150   :  { %v250_v23 = vadd.f32 %v249_v22, %v122_v20  ;;  %v251_v24 = vpop.f32.mrb[1].mxu0 }
 0x151   :  { %v252_v25 = vadd.f32 %v251_v24, %v126_v21  ;;  %v253_v26 = vpop.f32.mrb[2].mxu0 }
 0x152   :  { %v254_v27 = vadd.f32 %v253_v26, %v122_v20  ;;  %v255_v28 = vpop.f32.mrb[3].mxu0  ;;  %v258_v30 = vmax.f32 %v250_v23, 0.0 }
 0x153   :  { %v256_v29 = vadd.f32 %v255_v28, %v126_v21  ;;  %v259_v32 = vmax.f32 %v252_v25, 0.0  ;;  %v594_v25 = vrot.slane %v581_v8, %v593_v11  ;;  %v1791_v8 = vld [vmem:[#allocation10 + $0x20] sm:$0xff]   ;;  %v1792_v11 = vld [vmem:[#allocation10 + $0x30] sm:$0xff]  }
 0x154   :  { %v260_v31 = vmax.f32 %v254_v27, 0.0 }
 0x155   :  { %v261_v33 = vmax.f32 %v256_v29, 0.0 }
 0x156   :  { %v262_v34 = vpack.c.bf16 %v260_v31, %v258_v30 }
 0x157   :  { %v263_v35 = vpack.c.bf16 %v261_v33, %v259_v32 }
 0x159   :  { %500 = vmatprep.mubr.bf16.mxu1 %v263_v35 }
 0x15a   :  { %501 = vmatmul.mubr.bf16.vlgmr.msra.gmra.mrb[0].mxu1 %v262_v34 }
 0x15b   :  { %1517 = vmatpush3.bf16.msra.mxu1 %v1745_v36 }
 0x15c   :  { %1518 = vmatprep.subr.bf16.mxu1 %v1749_v37 }
 0x15f   :  { %1519 = vmatpush3.bf16.msra.mxu1 %v1750_v38 }
 0x160   :  { %1520 = vmatprep.subr.bf16.mxu1 %v1754_v39 }
 0x163   :  { %1521 = vmatpush3.bf16.msra.mxu1 %v1755_v40 }
 0x164   :  { %1522 = vmatprep.subr.bf16.mxu1 %v1759_v41 }
 0x167   :  { %1523 = vmatpush3.bf16.msra.mxu1 %v1760_v42 }
 0x168   :  { %1524 = vmatprep.subr.bf16.mxu1 %v1764_v43 }
 0x16b   :  { %1525 = vmatpush3.bf16.msra.mxu1 %v1765_v44 }
 0x16c   :  { %1526 = vmatprep.subr.bf16.mxu1 %v1769_v45 }
 0x16f   :  { %1527 = vmatpush3.bf16.msra.mxu1 %v1770_v46 }
 0x170   :  { %1528 = vmatprep.subr.bf16.mxu1 %v1774_v48 }
 0x173   :  { %1529 = vmatpush3.bf16.msra.mxu1 %v1775_v50 }
 0x174   :  { %1530 = vmatprep.subr.bf16.mxu1 %v1779_v52  ;;  %v1783_v52 = vld [vmem:[#allocation10] sm:$0xff]  }
 0x177   :  { %1531 = vmatpush3.bf16.msra.mxu1 %v1780_v54 }
 0x178   :  { %1585 = vmatprep.subr.bf16.mxu1 %v1983_v55 }
 0x22d   :  { %v502_v58 = vpop.f32.mrb[0].mxu1 }
 0x22e   :  { %v503_v59 = vadd.f32 %v502_v58, %v301_v56  ;;  %v504_v60 = vpop.f32.mrb[1].mxu1 }
 0x22f   :  { %v505_v61 = vadd.f32 %v504_v60, %v305_v57  ;;  %v506_v62 = vpop.f32.mrb[2].mxu1 }
 0x230   :  { %v507_v63 = vadd.f32 %v506_v62, %v301_v56  ;;  %v508_v0 = vpop.f32.mrb[3].mxu1  ;;  %v511_v2 = vmax.f32 %v503_v59, 0.0  ;;  %v1782_v56 = vld [vmem:[#allocation10 + $0x8] sm:$0xff]  }
 0x231   :  { %v509_v1 = vadd.f32 %v508_v0, %v305_v57  ;;  %v512_v4 = vmax.f32 %v505_v61, 0.0  ;;  %v1784_v61 = vld [vmem:[#allocation10 + $0x10] sm:$0xff]   ;;  %v1785_v0 = vld [vmem:[#allocation10 + $0x8] sm:$0xff]  }
 0x232   :  { %v513_v3 = vmax.f32 %v507_v63, 0.0 }
 0x233   :  { %v514_v5 = vmax.f32 %v509_v1, 0.0  ;;  %v1786_v1 = vld [vmem:[#allocation10 + $0x18] sm:$0xff]  }
 0x234   :  { %v515_v6 = vpack.c.bf16 %v513_v3, %v511_v2  ;;  %v1787_v2 = vld [vmem:[#allocation10 + $0x10] sm:$0xff]   ;;  %v1788_v3 = vld [vmem:[#allocation10 + $0x20] sm:$0xff]  }
 0x235   :  { %v516_v7 = vpack.c.bf16 %v514_v5, %v512_v4  ;;  %v1789_v4 = vld [vmem:[#allocation10 + $0x18] sm:$0xff]  }
 0x237   :  { %886 = vmatprep.mubr.bf16.mxu0 %v516_v7  ;;  %929 = vmatprep.mubr.bf16.mxu1 %v516_v7 }
 0x238   :  { %887 = vmatmul.mubr.bf16.vlgmr.msra.gmra.mrb[4].mxu0 %v515_v6  ;;  %930 = vmatmul.mubr.bf16.vlgmr.msra.gmra.mrb[4].mxu1 %v515_v6  ;;  %v1790_v6 = vld [vmem:[#allocation10 + $0x28] sm:$0xff]  }
 0x239   :  { %1566 = vmatpush3.bf16.msra.mxu0 %v1781_v51  ;;  %1586 = vmatpush3.bf16.msra.mxu1 %v1783_v52 }
 0x23a   :  { %1567 = vmatprep.subr.bf16.mxu0 %v1983_v55  ;;  %1587 = vmatprep.subr.bf16.mxu1 %v1983_v55 }
 0x23b   :  { %1581 = vmatprep.mubr.msk.bf16.mxu0 %vm1984_vm0, %v1983_v55  ;;  %1601 = vmatprep.mubr.msk.bf16.mxu1 %vm1984_vm0, %v1983_v55 }
 0x23d   :  { %1568 = vmatpush3.bf16.msra.mxu0 %v1782_v56  ;;  %1588 = vmatpush3.bf16.msra.mxu1 %v1785_v0 }
 0x23e   :  { %1569 = vmatprep.subr.bf16.mxu0 %v1983_v55  ;;  %1589 = vmatprep.subr.bf16.mxu1 %v1983_v55 }
 0x241   :  { %1570 = vmatpush3.bf16.msra.mxu0 %v1784_v61  ;;  %1590 = vmatpush3.bf16.msra.mxu1 %v1787_v2 }
 0x242   :  { %1571 = vmatprep.subr.bf16.mxu0 %v1983_v55  ;;  %1591 = vmatprep.subr.bf16.mxu1 %v1983_v55 }
 0x245   :  { %1572 = vmatpush3.bf16.msra.mxu0 %v1786_v1  ;;  %1592 = vmatpush3.bf16.msra.mxu1 %v1789_v4 }
 0x246   :  { %1573 = vmatprep.subr.bf16.mxu0 %v1983_v55  ;;  %1593 = vmatprep.subr.bf16.mxu1 %v1983_v55 }
 0x249   :  { %1574 = vmatpush3.bf16.msra.mxu0 %v1788_v3  ;;  %1594 = vmatpush3.bf16.msra.mxu1 %v1791_v8 }
 0x24a   :  { %1575 = vmatprep.subr.bf16.mxu0 %v1983_v55  ;;  %1595 = vmatprep.subr.bf16.mxu1 %v1983_v55 }
 0x24d   :  { %1576 = vmatpush3.bf16.msra.mxu0 %v1790_v6 }
 0x24e   :  { %1577 = vmatprep.subr.bf16.mxu0 %v1983_v55 }
 0x251   :  { %1578 = vmatpush3.bf16.msra.mxu0 %v1792_v11 }
 0x252   :  { %1579 = vmatprep.subr.bf16.mxu0 %v1983_v55 }
 0x30b   :  { %v888_v12 = vpop.f32.mrb[4].mxu0  ;;  %v1532_v13 = vpop.f32.mrb[4].mxu1 }
 0x30c   :  { %v889_v14 = vadd.f32 %v888_v12, %v586_v9  ;;  %v890_v15 = vpop.f32.mrb[5].mxu0  ;;  %v1533_v18 = vpop.f32.mrb[5].mxu1 }
 0x30d   :  { %v891_v20 = vadd.f32 %v890_v15, %v590_v10  ;;  %v1534_v21 = vadd.f32 %v1533_v18, %v1532_v13  ;;  %v892_v22 = vpop.f32.mrb[6].mxu0  ;;  %v1535_v23 = vpop.f32.mrb[6].mxu1 }
 0x30e   :  { %v2129_v24 = vmax.f32 %v889_v14, 0.0  ;;  %v893_v26 = vadd.f32 %v892_v22, %v586_v9  ;;  %v894_v27 = vpop.f32.mrb[7].mxu0  ;;  %v1536_v28 = vpop.f32.mrb[7].mxu1  ;;  %v1793_v14 = vld [vmem:[#allocation10 + $0x28] sm:$0xff]  }
 0x30f   :  { %v2131_v17 = vmax.f32 %v891_v20, 0.0  ;;  %v895_v19 = vadd.f32 %v894_v27, %v590_v10  ;;  %v1537_v29 = vadd.f32 %v1536_v28, %v1535_v23  ;;  %v932_v16 = vadd.f32 %v1534_v21, %v594_v25  ;;  %1596 = vmatpush3.bf16.msra.mxu1 %v1793_v14  ;;  %v1794_v20 = vld [vmem:[#allocation10 + $0x38] sm:$0xff]   ;;  %v1795_v21 = vld [vmem:[#allocation10 + $0x30] sm:$0xff]  }
 0x310   :  { %944 = vrot.lane.b32.xlu0 %v2129_v24, %s1971_s16  ;;  %v2137_v30 = vmax.f32 %v893_v26, 0.0  ;;  %1597 = vmatprep.subr.bf16.mxu1 %v1983_v55  ;;  %v1797_v27 = vld [vmem:[#allocation10 + $0x38] sm:$0xff]  }
 0x311   :  { %1088 = vrot.lane.b32.xlu1 %v2131_v17, %s1971_s16  ;;  %v2139_v31 = vmax.f32 %v895_v19, 0.0  ;;  %v935_v32 = vadd.f32 %v1537_v29, %v594_v25  ;;  %v2145_v33 = vmax.f32 %v932_v16, 0.0  ;;  %1580 = vmatpush3.bf16.msra.mxu0 %v1794_v20 }
 0x312   :  { %1605 = vmatprep.subr.bf16.mxu0 %v1983_v55 }
 0x313   :  { %v2147_v34 = vmax.f32 %v935_v32, 0.0  ;;  %1598 = vmatpush3.bf16.msra.mxu1 %v1795_v21 }
 0x314   :  { %946 = vrot.lane.b32.xlu0 %v2137_v30, %s1971_s16  ;;  %1599 = vmatprep.subr.bf16.mxu1 %v1983_v55 }
 0x315   :  { %1090 = vrot.lane.b32.xlu1 %v2139_v31, %s1971_s16 }
 0x317   :  { %1600 = vmatpush3.bf16.msra.mxu1 %v1797_v27 }
 0x318   :  { %1232 = vrot.lane.b32.xlu0 %v2145_v33, %s1971_s16 }
 0x319   :  { %1234 = vrot.lane.b32.xlu1 %v2147_v34, %s1971_s16  ;;  %s1982_s16 = smov 32  }
 0x382   :  { %v945_v35 = vpop.permute.xlu0 %944 }
 0x383   :  { %v948_v36 = vmax.f32 %v2129_v24, %v945_v35  ;;  %v1089_v37 = vpop.permute.xlu1 %1088 }
 0x384   :  { %v1092_v39 = vmax.f32 %v2131_v17, %v1089_v37 }
 0x385   :  { %950 = vrot.lane.b32.xlu0 %v948_v36, %s1981_s6 }
 0x386   :  { %v947_v38 = vpop.permute.xlu0 %946 }
 0x387   :  { %v949_v40 = vmax.f32 %v2137_v30, %v947_v38  ;;  %v1091_v41 = vpop.permute.xlu1 %1090 }
 0x388   :  { %v1093_v43 = vmax.f32 %v2139_v31, %v1091_v41 }
 0x389   :  { %1094 = vrot.lane.b32.xlu0 %v1092_v39, %s1981_s6  ;;  %952 = vrot.lane.b32.xlu1 %v949_v40, %s1981_s6 }
 0x38a   :  { %v1233_v42 = vpop.permute.xlu0 %1232 }
 0x38b   :  { %v1236_v44 = vmax.f32 %v2145_v33, %v1233_v42  ;;  %v1235_v45 = vpop.permute.xlu1 %1234 }
 0x38c   :  { %v1237_v46 = vmax.f32 %v2147_v34, %v1235_v45 }
 0x38d   :  { %1096 = vrot.lane.b32.xlu1 %v1093_v43, %s1981_s6  ;;  %1238 = vrot.lane.b32.xlu0 %v1236_v44, %s1981_s6 }
 0x391   :  { %1240 = vrot.lane.b32.xlu1 %v1237_v46, %s1981_s6 }
 0x3f7   :  { %v951_v47 = vpop.permute.xlu0 %950 }
 0x3f8   :  { %v954_v48 = vmax.f32 %v948_v36, %v951_v47 }
 0x3fa   :  { %956 = vrot.lane.b32.xlu0 %v954_v48, %s1982_s16 }
 0x3fb   :  { %v953_v49 = vpop.permute.xlu1 %952  ;;  %v1095_v50 = vpop.permute.xlu0 %1094 }
 0x3fc   :  { %v955_v53 = vmax.f32 %v949_v40, %v953_v49  ;;  %v1098_v54 = vmax.f32 %v1092_v39, %v1095_v50  ;;  %v1798_v49 = vld [vmem:[#allocation10 + $0x8] sm:$0xff]  }
 0x3fe   :  { %958 = vrot.lane.b32.xlu1 %v955_v53, %s1982_s16  ;;  %1100 = vrot.lane.b32.xlu0 %v1098_v54, %s1982_s16 }
 0x3ff   :  { %v1097_v57 = vpop.permute.xlu1 %1096  ;;  %v1239_v58 = vpop.permute.xlu0 %1238 }
 0x400   :  { %v1099_v59 = vmax.f32 %v1093_v43, %v1097_v57  ;;  %v1242_v60 = vmax.f32 %v1236_v44, %v1239_v58  ;;  %v1800_v57 = vld [vmem:[#allocation10 + $0x18] sm:$0xff]  }
 0x402   :  { %1102 = vrot.lane.b32.xlu1 %v1099_v59, %s1982_s16  ;;  %1244 = vrot.lane.b32.xlu0 %v1242_v60, %s1982_s16 }
 0x403   :  { %v1241_v62 = vpop.permute.xlu1 %1240 }
 0x404   :  { %v1243_v63 = vmax.f32 %v1237_v46, %v1241_v62  ;;  %v1796_v46 = vld [vmem:[#allocation10] sm:$0xff]   ;;  %v1802_v62 = vld [vmem:[#allocation10 + $0x28] sm:$0xff]  }
 0x406   :  { %1246 = vrot.lane.b32.xlu1 %v1243_v63, %s1982_s16 }
 0x46c   :  { %v957_v5 = vpop.permute.xlu0 %956 }
 0x46d   :  { %v960_v7 = vmax.f32 %v954_v48, %v957_v5 }
 0x46f   :  { %962 = vrot.lane.b32.xlu0 %v960_v7, %s1976_s5 }
 0x470   :  { %v959_v9 = vpop.permute.xlu1 %958  ;;  %v1101_v10 = vpop.permute.xlu0 %1100 }
 0x471   :  { %v961_v12 = vmax.f32 %v955_v53, %v959_v9  ;;  %v1104_v13 = vmax.f32 %v1098_v54, %v1101_v10  ;;  %v1799_v53 = vld [vmem:[#allocation10 + $0x10] sm:$0xff]  }
 0x473   :  { %964 = vrot.lane.b32.xlu1 %v961_v12, %s1976_s5  ;;  %1106 = vrot.lane.b32.xlu0 %v1104_v13, %s1976_s5 }
 0x474   :  { %v1103_v15 = vpop.permute.xlu1 %1102  ;;  %v1245_v18 = vpop.permute.xlu0 %1244 }
 0x475   :  { %v1105_v22 = vmax.f32 %v1099_v59, %v1103_v15  ;;  %v1248_v23 = vmax.f32 %v1242_v60, %v1245_v18  ;;  %v1801_v60 = vld [vmem:[#allocation10 + $0x20] sm:$0xff]  }
 0x477   :  { %1108 = vrot.lane.b32.xlu1 %v1105_v22, %s1976_s5  ;;  %1250 = vrot.lane.b32.xlu0 %v1248_v23, %s1976_s5 }
 0x478   :  { %v1247_v25 = vpop.permute.xlu1 %1246 }
 0x479   :  { %v1249_v26 = vmax.f32 %v1243_v63, %v1247_v25 }
 0x47b   :  { %1252 = vrot.lane.b32.xlu1 %v1249_v26, %s1976_s5  ;;  %s1985_s5 = smov [#allocation11]  }
 0x47c   :  { %s1381_s29 = sshll.u32 %s1985_s5, 4  ;;  %s1382_s29 = int_to_ptr.vmem [resolvable:$true] %s1381_s29 }
 0x47d   :  { %s1939_s1 = scalar_lea.vmem %s1382_s29, 768  ;;  %p1944_p13 = scmp.lt.s32.totalorder %s1382_s29, %s1382_s29 }
 0x47e   :  { %p1940_p12 = scmp.ne.s32.totalorder %s1382_s29, %s1939_s1  ;;  %p1945_p0 = scmp.lt.s32.totalorder %s1939_s1, %s1939_s1 }
 0x480   :  { %p1946_p1 = por %p1945_p0, %p1944_p13 }
 0x482   :  { %p1947_p2 = pnand %p1946_p1, %p1940_p12 }
 0x4e1   :  { %v963_v28 = vpop.permute.xlu0 %962 }
 0x4e2   :  { %v966_v19 = vmax.f32 %v960_v7, %v963_v28 }
 0x4e4   :  { %v2187_v29 = vsub.f32 %v2129_v24, %v966_v19 }
 0x4e5   :  { %v965_v16 = vpop.permute.xlu1 %964  ;;  %v1107_v32 = vpop.permute.xlu0 %1106 }
 0x4e6   :  { %v967_v35 = vmax.f32 %v961_v12, %v965_v16  ;;  %v1110_v36 = vmax.f32 %v1104_v13, %v1107_v32  ;;  %v970_v37 = vmul.f32 1.442695, %v2187_v29 }
 0x4e8   :  { %v2191_v38 = vsub.f32 %v2137_v30, %v967_v35  ;;  %v2194_v39 = vsub.f32 %v2131_v17, %v1110_v36  ;;  %1805 = vpow2.f32 %v970_v37 }
 0x4e9   :  { %v1109_v40 = vpop.permute.xlu1 %1108  ;;  %v1251_v51 = vpop.permute.xlu0 %1250 }
 0x4ea   :  { %v972_v41 = vmul.f32 1.442695, %v2191_v38  ;;  %v1111_v42 = vmax.f32 %v1105_v22, %v1109_v40  ;;  %v1114_v24 = vmul.f32 1.442695, %v2194_v39  ;;  %v1254_v54 = vmax.f32 %v1248_v23, %v1251_v51 }
 0x4ec   :  { %1807 = vpow2.f32 %v972_v41  ;;  %v2199_v43 = vsub.f32 %v2139_v31, %v1111_v42  ;;  %v2211_v58 = vsub.f32 %v2145_v33, %v1254_v54  ;;  %v1804_v33 = vld [vmem:[#allocation10 + $0x38] sm:$0xff]  }
 0x4ed   :  { %1809 = vpow2.f32 %v1114_v24  ;;  %v1253_v50 = vpop.permute.xlu1 %1252 }
 0x4ee   :  { %v1116_v44 = vmul.f32 1.442695, %v2199_v43  ;;  %v1255_v52 = vmax.f32 %v1249_v26, %v1253_v50  ;;  %v1258_v61 = vmul.f32 1.442695, %v2211_v58 }
 0x4f0   :  { %1811 = vpow2.f32 %v1116_v44  ;;  %v2207_v56 = vsub.f32 %v2147_v34, %v1255_v52  ;;  %v1803_v34 = vld [vmem:[#allocation10 + $0x30] sm:$0xff]  }
 0x4f2   :  { %v1806_v30 = vpop.eup %1805  ;;  %v1260_v59 = vmul.f32 1.442695, %v2207_v56 }
 0x4f4   :  { %1813 = vpow2.f32 %v1260_v59 }
 0x4f5   :  { %1815 = vpow2.f32 %v1258_v61 }
 0x4f6   :  { %v1808_v45 = vpop.eup %1807 }
 0x4f7   :  { %v974_v17 = vpack.c.bf16 %v1808_v45, %v1806_v30  ;;  %v1810_v47 = vpop.eup %1809 }
 0x4f9   :  { %1582 = vmatmul.mubr.bf16.vlgmr.msra.gmra.mrb[8].mxu0 %v974_v17 }
 0x4fa   :  { %v1812_v48 = vpop.eup %1811  ;;  %1606 = vmatpush3.bf16.msra.mxu0 %v1796_v46  ;;  %1621 = vmatprep.mubr.msk.bf16.mxu0 %vm1984_vm0, %v1983_v55 }
 0x4fb   :  { %1607 = vmatprep.subr.bf16.mxu0 %v1983_v55  ;;  %v1118_v31 = vpack.c.bf16 %v1812_v48, %v1810_v47 }
 0x4fd   :  { %1602 = vmatmul.mubr.bf16.vlgmr.msra.gmra.mrb[8].mxu1 %v1118_v31 }
 0x4fe   :  { %1608 = vmatpush3.bf16.msra.mxu0 %v1798_v49  ;;  %v1814_v63 = vpop.eup %1813 }
 0x4ff   :  { %1609 = vmatprep.subr.bf16.mxu0 %v1983_v55  ;;  %v1816_v0 = vpop.eup %1815 }
 0x500   :  { %v1262_v1 = vpack.c.bf16 %v1814_v63, %v1816_v0 }
 0x502   :  { %1610 = vmatpush3.bf16.msra.mxu0 %v1799_v53 }
 0x503   :  { %1611 = vmatprep.subr.bf16.mxu0 %v1983_v55 }
 0x506   :  { %1612 = vmatpush3.bf16.msra.mxu0 %v1800_v57 }
 0x507   :  { %1613 = vmatprep.subr.bf16.mxu0 %v1983_v55 }
 0x50a   :  { %1614 = vmatpush3.bf16.msra.mxu0 %v1801_v60 }
 0x50b   :  { %1615 = vmatprep.subr.bf16.mxu0 %v1983_v55 }
 0x50e   :  { %1616 = vmatpush3.bf16.msra.mxu0 %v1802_v62 }
 0x50f   :  { %1617 = vmatprep.subr.bf16.mxu0 %v1983_v55 }
 0x512   :  { %1618 = vmatpush3.bf16.msra.mxu0 %v1803_v34 }
 0x513   :  { %1619 = vmatprep.subr.bf16.mxu0 %v1983_v55 }
 0x516   :  { %1620 = vmatpush3.bf16.msra.mxu0 %v1804_v33 }
 0x519   :  { %1622 = vmatmul.mubr.bf16.vlgmr.msra.gmra.mrb[12].mxu0 %v1262_v1 }
 0x5cc   :  { %v1073_v2 = vpop.f32.mrb[8].mxu0 }
 0x5cd   :  { %1817 = vlog2.f32 %v1073_v2  ;;  %v1583_v3 = vpop.f32.mrb[9].mxu0 }
 0x5ce   :  { %v1076_v4 = vpop.f32.mrb[10].mxu0 }
 0x5cf   :  { %1819 = vlog2.f32 %v1076_v4  ;;  %v1584_v5 = vpop.f32.mrb[11].mxu0 }
 0x5d0   :  { %v1217_v6 = vpop.f32.mrb[8].mxu1 }
 0x5d1   :  { %1821 = vlog2.f32 %v1217_v6  ;;  %v1603_v7 = vpop.f32.mrb[9].mxu1 }
 0x5d2   :  { %v1220_v8 = vpop.f32.mrb[10].mxu1 }
 0x5d3   :  { %1823 = vlog2.f32 %v1220_v8  ;;  %v1604_v9 = vpop.f32.mrb[11].mxu1 }
 0x5d7   :  { %v1818_v10 = vpop.eup %1817 }
 0x5d8   :  { %v1081_v11 = vmul.f32 0.6931472, %v1818_v10 }
 0x5d9   :  { %v1820_v55 = vpop.eup %1819 }
 0x5da   :  { %v1084_v12 = vsub.f32 %v2187_v29, %v1081_v11  ;;  %v1083_v13 = vmul.f32 0.6931472, %v1820_v55 }
 0x5db   :  { %v1822_v14 = vpop.eup %1821 }
 0x5dc   :  { %1086 = vst [vmem:[#allocation11] sm:$0xff] %v1084_v12  ;;  %v1085_v15 = vsub.f32 %v2191_v38, %v1083_v13  ;;  %v1225_v18 = vmul.f32 0.6931472, %v1822_v14 }
 0x5dd   :  { %v1824_v20 = vpop.eup %1823 }
 0x5de   :  { %1087 = vst [vmem:[#allocation11 + $0x18] sm:$0xff] %v1085_v15  ;;  %v1228_v21 = vsub.f32 %v2194_v39, %v1225_v18  ;;  %v1227_v22 = vmul.f32 0.6931472, %v1824_v20 }
 0x5e0   :  { %1230 = vst [vmem:[#allocation11 + $0x8] sm:$0xff] %v1228_v21  ;;  %v1229_v23 = vsub.f32 %v2199_v43, %v1227_v22 }
 0x5e2   :  { %1231 = vst [vmem:[#allocation11 + $0x20] sm:$0xff] %v1229_v23 }
 0x5ec   :  { %v1361_v25 = vpop.f32.mrb[12].mxu0 }
 0x5ed   :  { %1825 = vlog2.f32 %v1361_v25  ;;  %v1623_v26 = vpop.f32.mrb[13].mxu0 }
 0x5ee   :  { %v1364_v27 = vpop.f32.mrb[14].mxu0 }
 0x5ef   :  { %1827 = vlog2.f32 %v1364_v27  ;;  %v1624_v28 = vpop.f32.mrb[15].mxu0 }
 0x5f7   :  { %v1826_v19 = vpop.eup %1825 }
 0x5f8   :  { %v1369_v29 = vmul.f32 0.6931472, %v1826_v19 }
 0x5f9   :  { %v1828_v16 = vpop.eup %1827 }
 0x5fa   :  { %v1372_v32 = vsub.f32 %v2211_v58, %v1369_v29  ;;  %v1371_v35 = vmul.f32 0.6931472, %v1828_v16 }
 0x5fc   :  { %1374 = vst [vmem:[#allocation11 + $0x10] sm:$0xff] %v1372_v32  ;;  %v1373_v36 = vsub.f32 %v2207_v56, %v1371_v35 }
 0x5fe   :  { %1375 = vst [vmem:[#allocation11 + $0x28] sm:$0xff] %v1373_v36 }
 0x5ff   :  { %1950 = shalt.err (!%p1947_p2)
}
 0x600   :  { %s1951_s9 = scalar_lea.hbm %s2245_s8, 768 }
 0x601   :  { %p1952_p3 = scmp.ne.s32.totalorder %s2245_s8, %s1951_s9  ;;  %p1955_p4 = scmp.lt.u32.totalorder %s1951_s9, %s2245_s8 }
 0x603   :  { %p1957_p5 = pnand %p1955_p4, %p1952_p3 }
 0x605   :  { %1960 = shalt.err (!%p1957_p5)
}
 0x606   :  { %s1986_s11 = smov 384   ;;  %s1987_s14 = smov 24  }
 0x607   :  { %1387 = dma.vmem_to_hbm [thread:$0]  %s1382_s29, 768, %s2245_s8, [#allocation4], %s1986_s11, %s1986_s11, %s1987_s14  }
 0x608   :  { %1967 = dma.done.wait [#allocation4], 768  }
 0x609   :  { %1968 = vsyncadd [#allocation4], 4294966528 }
 0x60a   :  { %1391 = vsyncpa [#allocation3], 1 }
 0x60b   :  { %1392 = vsyncpa [#allocation6], 1 }
 0x60c   :  { %1393 = vsyncpa [#allocation9], 1 }
 0x60d   :  { %1394 = vsyncpa [#allocation4], 1 }

</bundles_post_ra>
